<compile_context>
chip_gen: v6e
topology: v6e:2x2x1
jax: 0.10.0
libtpu: 0.0.40
codegen_flags: <defaults>
</compile_context>

<pallas_src>
import functools
import math

import jax
import jax.numpy as jnp
from jax.experimental import pallas as pl
from jax.experimental.pallas import tpu as pltpu

BN_EPS = 1e-5


# ---------------------------------------------------------------------------
# Generation-aware VMEM budgets
# ---------------------------------------------------------------------------
@functools.lru_cache(maxsize=1)
def _vmem_capacity_bytes():
    try:
        return int(pltpu.get_tpu_info().vmem_capacity_bytes)
    except Exception:                      # pragma: no cover - conservative default
        return 128 * 1024 * 1024


def _vmem_limit_bytes():
    cap = _vmem_capacity_bytes()
    if cap <= 64 * 1024 * 1024:            # v7x: 64 MiB physical per TensorCore
        return 36 * 1024 * 1024
    return 48 * 1024 * 1024                # v5e / v6e: 128 MiB physical


def _fused_weight_budget_bytes():
    cap = _vmem_capacity_bytes()
    if cap <= 64 * 1024 * 1024:            # v7x
        return 14 * 1024 * 1024
    return 28 * 1024 * 1024                # v5e / v6e


# ---------------------------------------------------------------------------
# Tile selection helpers
# ---------------------------------------------------------------------------
def _pick_tile(dim, pref, mult):
    """Largest tile <= pref that divides `dim` and is a multiple of `mult`
    (or the full dim, which is always a legal block)."""
    if dim <= pref:
        return dim
    t = (pref // mult) * mult
    while t >= mult:
        if dim % t == 0:
            return t
        t -= mult
    return dim


def _pick_fused_tm(M, pref):
    """Batch tile for the fused kernel.  Prefer >=2 grid steps (v7x has two
    TensorCores) as long as each step still carries >=256 rows of MXU work."""
    if M <= pref:
        half = M // 2
        if half >= 256 and M % 2 == 0 and half % 16 == 0:
            return half
        return M
    return _pick_tile(M, pref, 16)


def _apply_activation(y, act_function: str):
    if act_function == "relu":
        return jnp.maximum(y, 0.0)
    elif act_function == "sigmoid":
        return jax.nn.sigmoid(y)
    elif act_function == "tanh":
        return jnp.tanh(y)
    else:
        raise ValueError(f"unsupported activation: {act_function}")


# ---------------------------------------------------------------------------
# Per-layer tiled kernel (general path: K-reduction over grid axis 2)
# ---------------------------------------------------------------------------
def _mlp_layer_kernel(x_ref, w_ref, scale_ref, shift_ref, o_ref, acc_ref, *,
                      act_function: str):
    k = pl.program_id(2)

    @pl.when(k == 0)
    def _():
        acc_ref[...] = jnp.zeros_like(acc_ref)

    # Cast the activation tile to bf16 in-kernel (no wrapper-level HBM cast pass).
    acc_ref[...] += jnp.dot(x_ref[...].astype(jnp.bfloat16), w_ref[...],
                            preferred_element_type=jnp.float32)

    @pl.when(k == pl.num_programs(2) - 1)
    def _():
        # bias + eval-mode BatchNorm folded into (scale, shift)
        y = acc_ref[...] * scale_ref[...] + shift_ref[...]
        y = _apply_activation(y, act_function)
        # Dropout: eval mode -> identity.
        o_ref[...] = y.astype(o_ref.dtype)


def mlp_layer_tiled(x, w_t, scale, shift, *, act_function, out_dtype,
                    tm=512, tn=512, tk=1024):
    """x: [M, K] f32/bf16, w_t: [K, N] bf16, scale/shift: [1, N] f32."""
    M, K = x.shape
    Kw, N = w_t.shape
    assert K == Kw

    tm = _pick_tile(M, tm, 16)
    tn = _pick_tile(N, tn, 128)
    tk = _pick_tile(K, tk, 128)

    grid = (M // tm, N // tn, K // tk)
    vec_spec = pl.BlockSpec((1, tn), lambda i, j, k: (0, j))

    kernel = functools.partial(_mlp_layer_kernel, act_function=act_function)

    return pl.pallas_call(
        kernel,
        out_shape=jax.ShapeDtypeStruct((M, N), out_dtype),
        grid_spec=pltpu.PrefetchScalarGridSpec(
            num_scalar_prefetch=0,
            grid=grid,
            in_specs=[
                pl.BlockSpec((tm, tk), lambda i, j, k: (i, k)),   # x (f32/bf16)
                pl.BlockSpec((tk, tn), lambda i, j, k: (k, j)),   # w_t (bf16)
                vec_spec,                                         # scale (f32)
                vec_spec,                                         # shift (f32)
            ],
            out_specs=pl.BlockSpec((tm, tn), lambda i, j, k: (i, j)),
            scratch_shapes=[pltpu.VMEM((tm, tn), jnp.float32)],
        ),
        compiler_params=pltpu.CompilerParams(
            dimension_semantics=("parallel", "parallel", "arbitrary"),
            vmem_limit_bytes=_vmem_limit_bytes()),
    )(x, w_t, scale, shift)


# ---------------------------------------------------------------------------
# Fully-fused kernel (all layers in one pallas_call; grid over batch tiles only)
# ---------------------------------------------------------------------------
def _mlp_fused_kernel(*refs, num_layers: int, act_function: str):
    x_ref = refs[0]
    o_ref = refs[-1]
    layer_refs = refs[1:-1]

    h = x_ref[...].astype(jnp.bfloat16)               # in-kernel cast of the f32 input
    for l in range(num_layers):
        w_ref, scale_ref, shift_ref = layer_refs[3 * l:3 * l + 3]
        y = jnp.dot(h, w_ref[...], preferred_element_type=jnp.float32)
        y = y * scale_ref[...] + shift_ref[...]       # bias + BN(eval) folded
        y = _apply_activation(y, act_function)
        # Dropout: eval mode -> identity.
        h = y.astype(jnp.bfloat16) if l + 1 < num_layers else y
    o_ref[...] = h.astype(o_ref.dtype)


def mlp_fused(x, prepped, *, act_function, tm=512, out_dtype=jnp.float32):
    """x: [M, in_dim]; prepped: list of dicts with w_t (bf16), scale, shift."""
    M, in_dim = x.shape
    tm = _pick_fused_tm(M, tm)
    assert M % tm == 0

    num_layers = len(prepped)
    out_dim = prepped[-1]["w_t"].shape[1]

    kernel = functools.partial(_mlp_fused_kernel,
                               num_layers=num_layers,
                               act_function=act_function)

    args = [x]
    for p in prepped:
        args += [p["w_t"], p["scale"], p["shift"]]

    def build(single_buffer_weights):
        resident = {}
        if single_buffer_weights:
            # Weights/scale/shift never change across the batch grid; a single VMEM
            # buffer (no double buffering) halves their resident footprint.
            resident["pipeline_mode"] = pl.Buffered(1)
        in_specs = [pl.BlockSpec((tm, in_dim), lambda i: (i, 0))]
        for p in prepped:
            K_l, N_l = p["w_t"].shape
            in_specs.append(pl.BlockSpec((K_l, N_l), lambda i: (0, 0), **resident))
            in_specs.append(pl.BlockSpec((1, N_l), lambda i: (0, 0), **resident))
            in_specs.append(pl.BlockSpec((1, N_l), lambda i: (0, 0), **resident))
        return pl.pallas_call(
            kernel,
            out_shape=jax.ShapeDtypeStruct((M, out_dim), out_dtype),
            grid_spec=pltpu.PrefetchScalarGridSpec(
                num_scalar_prefetch=0,
                grid=(M // tm,),
                in_specs=in_specs,
                out_specs=pl.BlockSpec((tm, out_dim), lambda i: (i, 0)),
            ),
            compiler_params=pltpu.CompilerParams(
                dimension_semantics=("parallel",),
                vmem_limit_bytes=_vmem_limit_bytes()),
        )

    try:
        return build(True)(*args)
    except Exception:
        # Fallback if this jax version rejects pipeline_mode=pl.Buffered(1).
        return build(False)(*args)


# ---------------------------------------------------------------------------
# Parameter init / prep / forward / reference
# ---------------------------------------------------------------------------
def init_mlp_params(key, in_dim, layers_dim):
    """Deterministic init mirroring the PyTorch module (xavier_normal_ weights)."""
    params = []
    d_in = in_dim
    for d_out in layers_dim:
        key, kw, kb = jax.random.split(key, 3)
        std = math.sqrt(2.0 / (d_in + d_out))                          # xavier normal
        w = std * jax.random.normal(kw, (d_out, d_in), jnp.float32)    # PyTorch layout [out, in]
        bound = 1.0 / math.sqrt(d_in)
        b = jax.random.uniform(kb, (d_out,), jnp.float32, -bound, bound)
        params.append(dict(w=w, b=b,
                           gamma=jnp.ones((d_out,), jnp.float32),
                           beta=jnp.zeros((d_out,), jnp.float32),
                           mean=jnp.zeros((d_out,), jnp.float32),
                           var=jnp.ones((d_out,), jnp.float32)))
        d_in = d_out
    return params


def prepare_mlp_params(params, *, batch_norm):
    """Pre-transpose + pre-cast weights once; fold bias + eval-BN into (scale, shift)."""
    prepped = []
    for p in params:
        w_t = jnp.asarray(p["w"].T, dtype=jnp.bfloat16)    # [in, out], done once
        n = w_t.shape[1]
        if batch_norm:
            scale = p["gamma"] * jax.lax.rsqrt(p["var"] + BN_EPS)
            shift = (p["b"] - p["mean"]) * scale + p["beta"]
        else:
            scale = jnp.ones((n,), jnp.float32)
            shift = p["b"]
        prepped.append(dict(
            w_t=w_t,
            scale=scale.reshape(1, n).astype(jnp.float32),
            shift=shift.reshape(1, n).astype(jnp.float32)))
    return prepped


def mlp_forward(x, prepped, *, act_function="relu", use_fused=None, tm=512,
                final_dtype=jnp.float32):
    """Apply the full MLP. Fused single-kernel path when weights fit in VMEM."""
    if use_fused is None:
        weight_bytes = sum(int(p["w_t"].size) * p["w_t"].dtype.itemsize for p in prepped)
        use_fused = weight_bytes <= _fused_weight_budget_bytes()

    if use_fused:
        return mlp_fused(x, prepped, act_function=act_function, tm=tm,
                         out_dtype=final_dtype)

    # TODO(synk): add middle path (emit_pipeline-streamed weights with VMEM-resident
    # activations) for models too large to fully fuse but small enough to avoid
    # per-layer activation HBM round-trips.
    h = x                                   # first layer casts to bf16 in-kernel
    for idx, p in enumerate(prepped):
        last = idx == len(prepped) - 1
        h = mlp_layer_tiled(
            h, p["w_t"], p["scale"], p["shift"],
            act_function=act_function,
            out_dtype=final_dtype if last else jnp.bfloat16,
            tm=tm)
    return h


def mlp_reference(x, params, *, act_function="relu", batch_norm=True):
    """Pure-JAX reference mimicking the kernel's bf16 matmul inputs / f32 accumulation."""
    h = x
    for p in params:
        w_t = p["w"].T.astype(jnp.bfloat16)
        y = jnp.dot(h.astype(jnp.bfloat16), w_t, preferred_element_type=jnp.float32)
        y = y + p["b"]
        if batch_norm:
            y = (y - p["mean"]) * jax.lax.rsqrt(p["var"] + BN_EPS) * p["gamma"] + p["beta"]
        h = _apply_activation(y, act_function)
    return h


if __name__ == "__main__":
    key = jax.random.PRNGKey(0)
    key, kx = jax.random.split(key)

    batch = 16
    in_dim = 128
    layers_dim = [128, 128]
    dropout_rate = [0.1, 0.2]   # identity in eval mode
    act_function = "relu"
    batch_norm = True

    x = jax.random.normal(kx, (batch, in_dim), jnp.float32)
    params = init_mlp_params(key, in_dim, layers_dim)
    prepped = prepare_mlp_params(params, batch_norm=batch_norm)

    ref = mlp_reference(x, params, act_function=act_function, batch_norm=batch_norm)

    # Fused (all layers in one kernel, activations stay in VMEM).
    out_fused = mlp_forward(x, prepped, act_function=act_function, use_fused=True)
    out_fused = jax.block_until_ready(out_fused)
    assert out_fused.shape == (batch, layers_dim[-1])
    assert jnp.allclose(out_fused, ref, atol=2e-2, rtol=2e-2), "fused mismatch vs reference"

    # Tiled per-layer path (general / large-model fallback).
    out_tiled = mlp_forward(x, prepped, act_function=act_function, use_fused=False)
    out_tiled = jax.block_until_ready(out_tiled)
    assert out_tiled.shape == (batch, layers_dim[-1])
    assert jnp.allclose(out_tiled, ref, atol=2e-2, rtol=2e-2), "tiled mismatch vs reference"

    print("KERNEL_OK")
</pallas_src>

<mosaic_0001>
module attributes {stable_mosaic.version = 11 : i64} {
  func.func @_mlp_fused_kernel(%arg0: i32, %arg1: memref<16x128xf32, #tpu.memory_space<vmem>>, %arg2: memref<128x128xbf16, #tpu.memory_space<vmem>>, %arg3: memref<1x128xf32, #tpu.memory_space<vmem>>, %arg4: memref<1x128xf32, #tpu.memory_space<vmem>>, %arg5: memref<128x128xbf16, #tpu.memory_space<vmem>>, %arg6: memref<1x128xf32, #tpu.memory_space<vmem>>, %arg7: memref<1x128xf32, #tpu.memory_space<vmem>>, %arg8: memref<16x128xf32, #tpu.memory_space<vmem>>) attributes {dimension_semantics = [#tpu.dimension_semantics<parallel>], iteration_bounds = array<i64: 1>, scalar_prefetch = 0 : i64, scratch_operands = 0 : i64, tpu.core_type = #tpu.core_type<tc>, window_params = [{transform_indices = @transform_0, window_bounds = array<i64: 16, 128>}, {pipeline_mode = #tpu.pipeline_mode<synchronous>, transform_indices = @transform_1, window_bounds = array<i64: 128, 128>}, {pipeline_mode = #tpu.pipeline_mode<synchronous>, transform_indices = @transform_2, window_bounds = array<i64: 1, 128>}, {pipeline_mode = #tpu.pipeline_mode<synchronous>, transform_indices = @transform_3, window_bounds = array<i64: 1, 128>}, {pipeline_mode = #tpu.pipeline_mode<synchronous>, transform_indices = @transform_4, window_bounds = array<i64: 128, 128>}, {pipeline_mode = #tpu.pipeline_mode<synchronous>, transform_indices = @transform_5, window_bounds = array<i64: 1, 128>}, {pipeline_mode = #tpu.pipeline_mode<synchronous>, transform_indices = @transform_6, window_bounds = array<i64: 1, 128>}, {transform_indices = @transform_7, window_bounds = array<i64: 16, 128>}]} {
    %c0 = arith.constant 0 : index
    %c0_0 = arith.constant 0 : index
    %0 = vector.load %arg1[%c0, %c0_0] : memref<16x128xf32, #tpu.memory_space<vmem>>, vector<16x128xf32>
    %1 = arith.truncf %0 : vector<16x128xf32> to vector<16x128xbf16>
    %c0_1 = arith.constant 0 : index
    %c0_2 = arith.constant 0 : index
    %2 = vector.load %arg2[%c0_1, %c0_2] : memref<128x128xbf16, #tpu.memory_space<vmem>>, vector<128x128xbf16>
    %cst = arith.constant dense<0.000000e+00> : vector<16x128xf32>
    %3 = tpu.matmul %1, %2, %cst {dimension_numbers = #tpu.dot_dimension_numbers<[1], [0], [0], [1], [0, 0, 1, 1], [], []>} : vector<16x128xbf16>, vector<128x128xbf16>, vector<16x128xf32> -> vector<16x128xf32>
    %c0_3 = arith.constant 0 : index
    %c0_4 = arith.constant 0 : index
    %4 = vector.load %arg3[%c0_3, %c0_4] : memref<1x128xf32, #tpu.memory_space<vmem>>, vector<1x128xf32>
    %5 = vector.broadcast %4 : vector<1x128xf32> to vector<16x128xf32>
    %6 = arith.mulf %3, %5 : vector<16x128xf32>
    %c0_5 = arith.constant 0 : index
    %c0_6 = arith.constant 0 : index
    %7 = vector.load %arg4[%c0_5, %c0_6] : memref<1x128xf32, #tpu.memory_space<vmem>>, vector<1x128xf32>
    %8 = vector.broadcast %7 : vector<1x128xf32> to vector<16x128xf32>
    %9 = arith.addf %6, %8 : vector<16x128xf32>
    %cst_7 = arith.constant 0.000000e+00 : f32
    %10 = vector.broadcast %cst_7 : f32 to vector<16x128xf32>
    %11 = arith.maximumf %9, %10 : vector<16x128xf32>
    %12 = arith.truncf %11 : vector<16x128xf32> to vector<16x128xbf16>
    %c0_8 = arith.constant 0 : index
    %c0_9 = arith.constant 0 : index
    %13 = vector.load %arg5[%c0_8, %c0_9] : memref<128x128xbf16, #tpu.memory_space<vmem>>, vector<128x128xbf16>
    %cst_10 = arith.constant dense<0.000000e+00> : vector<16x128xf32>
    %14 = tpu.matmul %12, %13, %cst_10 {dimension_numbers = #tpu.dot_dimension_numbers<[1], [0], [0], [1], [0, 0, 1, 1], [], []>} : vector<16x128xbf16>, vector<128x128xbf16>, vector<16x128xf32> -> vector<16x128xf32>
    %c0_11 = arith.constant 0 : index
    %c0_12 = arith.constant 0 : index
    %15 = vector.load %arg6[%c0_11, %c0_12] : memref<1x128xf32, #tpu.memory_space<vmem>>, vector<1x128xf32>
    %16 = vector.broadcast %15 : vector<1x128xf32> to vector<16x128xf32>
    %17 = arith.mulf %14, %16 : vector<16x128xf32>
    %c0_13 = arith.constant 0 : index
    %c0_14 = arith.constant 0 : index
    %18 = vector.load %arg7[%c0_13, %c0_14] : memref<1x128xf32, #tpu.memory_space<vmem>>, vector<1x128xf32>
    %19 = vector.broadcast %18 : vector<1x128xf32> to vector<16x128xf32>
    %20 = arith.addf %17, %19 : vector<16x128xf32>
    %cst_15 = arith.constant 0.000000e+00 : f32
    %21 = vector.broadcast %cst_15 : f32 to vector<16x128xf32>
    %22 = arith.maximumf %20, %21 : vector<16x128xf32>
    %c0_16 = arith.constant 0 : index
    %c0_17 = arith.constant 0 : index
    %23 = vector.load %arg8[%c0_16, %c0_17] : memref<16x128xf32, #tpu.memory_space<vmem>>, vector<16x128xf32>
    tpu.vector_store %arg8[%c0_16, %c0_17], %22 {strides = array<i32>} : memref<16x128xf32, #tpu.memory_space<vmem>>, vector<16x128xf32>,
    return
  }
  func.func @transform_0(%arg0: i32) -> (i32, i32) {
    %c0_i32 = arith.constant 0 : i32
    %c0_i32_0 = arith.constant 0 : i32
    return %arg0, %c0_i32 : i32, i32
  }
  func.func @transform_1(%arg0: i32) -> (i32, i32) {
    %c0_i32 = arith.constant 0 : i32
    %c0_i32_0 = arith.constant 0 : i32
    %c0_i32_1 = arith.constant 0 : i32
    return %c0_i32, %c0_i32_0 : i32, i32
  }
  func.func @transform_2(%arg0: i32) -> (i32, i32) {
    %c0_i32 = arith.constant 0 : i32
    %c0_i32_0 = arith.constant 0 : i32
    %c0_i32_1 = arith.constant 0 : i32
    return %c0_i32, %c0_i32_0 : i32, i32
  }
  func.func @transform_3(%arg0: i32) -> (i32, i32) {
    %c0_i32 = arith.constant 0 : i32
    %c0_i32_0 = arith.constant 0 : i32
    %c0_i32_1 = arith.constant 0 : i32
    return %c0_i32, %c0_i32_0 : i32, i32
  }
  func.func @transform_4(%arg0: i32) -> (i32, i32) {
    %c0_i32 = arith.constant 0 : i32
    %c0_i32_0 = arith.constant 0 : i32
    %c0_i32_1 = arith.constant 0 : i32
    return %c0_i32, %c0_i32_0 : i32, i32
  }
  func.func @transform_5(%arg0: i32) -> (i32, i32) {
    %c0_i32 = arith.constant 0 : i32
    %c0_i32_0 = arith.constant 0 : i32
    %c0_i32_1 = arith.constant 0 : i32
    return %c0_i32, %c0_i32_0 : i32, i32
  }
  func.func @transform_6(%arg0: i32) -> (i32, i32) {
    %c0_i32 = arith.constant 0 : i32
    %c0_i32_0 = arith.constant 0 : i32
    %c0_i32_1 = arith.constant 0 : i32
    return %c0_i32, %c0_i32_0 : i32, i32
  }
  func.func @transform_7(%arg0: i32) -> (i32, i32) {
    %c0_i32 = arith.constant 0 : i32
    %c0_i32_0 = arith.constant 0 : i32
    return %arg0, %c0_i32 : i32, i32
  }
}

module attributes {stable_mosaic.version = 11 : i64} {
  func.func @_mlp_fused_kernel(%arg0: i32, %arg1: memref<16x128xf32, #tpu.memory_space<vmem>>, %arg2: memref<128x128xbf16, #tpu.memory_space<vmem>>, %arg3: memref<1x128xf32, #tpu.memory_space<vmem>>, %arg4: memref<1x128xf32, #tpu.memory_space<vmem>>, %arg5: memref<128x128xbf16, #tpu.memory_space<vmem>>, %arg6: memref<1x128xf32, #tpu.memory_space<vmem>>, %arg7: memref<1x128xf32, #tpu.memory_space<vmem>>, %arg8: memref<16x128xf32, #tpu.memory_space<vmem>>) attributes {dimension_semantics = [#tpu.dimension_semantics<parallel>], iteration_bounds = array<i64: 1>, scalar_prefetch = 0 : i64, scratch_operands = 0 : i64, tpu.core_type = #tpu.core_type<tc>, window_params = [{transform_indices = @transform_0, window_bounds = array<i64: 16, 128>}, {pipeline_mode = #tpu.pipeline_mode<synchronous>, transform_indices = @transform_1, window_bounds = array<i64: 128, 128>}, {pipeline_mode = #tpu.pipeline_mode<synchronous>, transform_indices = @transform_2, window_bounds = array<i64: 1, 128>}, {pipeline_mode = #tpu.pipeline_mode<synchronous>, transform_indices = @transform_3, window_bounds = array<i64: 1, 128>}, {pipeline_mode = #tpu.pipeline_mode<synchronous>, transform_indices = @transform_4, window_bounds = array<i64: 128, 128>}, {pipeline_mode = #tpu.pipeline_mode<synchronous>, transform_indices = @transform_5, window_bounds = array<i64: 1, 128>}, {pipeline_mode = #tpu.pipeline_mode<synchronous>, transform_indices = @transform_6, window_bounds = array<i64: 1, 128>}, {transform_indices = @transform_7, window_bounds = array<i64: 16, 128>}]} {
    %c0 = arith.constant 0 : index
    %c0_0 = arith.constant 0 : index
    %0 = vector.load %arg1[%c0, %c0_0] : memref<16x128xf32, #tpu.memory_space<vmem>>, vector<16x128xf32>
    %1 = arith.truncf %0 : vector<16x128xf32> to vector<16x128xbf16>
    %c0_1 = arith.constant 0 : index
    %c0_2 = arith.constant 0 : index
    %2 = vector.load %arg2[%c0_1, %c0_2] : memref<128x128xbf16, #tpu.memory_space<vmem>>, vector<128x128xbf16>
    %cst = arith.constant dense<0.000000e+00> : vector<16x128xf32>
    %3 = tpu.matmul %1, %2, %cst {dimension_numbers = #tpu.dot_dimension_numbers<[1], [0], [0], [1], [0, 0, 1, 1], [], []>} : vector<16x128xbf16>, vector<128x128xbf16>, vector<16x128xf32> -> vector<16x128xf32>
    %c0_3 = arith.constant 0 : index
    %c0_4 = arith.constant 0 : index
    %4 = vector.load %arg3[%c0_3, %c0_4] : memref<1x128xf32, #tpu.memory_space<vmem>>, vector<1x128xf32>
    %5 = vector.broadcast %4 : vector<1x128xf32> to vector<16x128xf32>
    %6 = arith.mulf %3, %5 : vector<16x128xf32>
    %c0_5 = arith.constant 0 : index
    %c0_6 = arith.constant 0 : index
    %7 = vector.load %arg4[%c0_5, %c0_6] : memref<1x128xf32, #tpu.memory_space<vmem>>, vector<1x128xf32>
    %8 = vector.broadcast %7 : vector<1x128xf32> to vector<16x128xf32>
    %9 = arith.addf %6, %8 : vector<16x128xf32>
    %cst_7 = arith.constant 0.000000e+00 : f32
    %10 = vector.broadcast %cst_7 : f32 to vector<16x128xf32>
    %11 = arith.maximumf %9, %10 : vector<16x128xf32>
    %12 = arith.truncf %11 : vector<16x128xf32> to vector<16x128xbf16>
    %c0_8 = arith.constant 0 : index
    %c0_9 = arith.constant 0 : index
    %13 = vector.load %arg5[%c0_8, %c0_9] : memref<128x128xbf16, #tpu.memory_space<vmem>>, vector<128x128xbf16>
    %cst_10 = arith.constant dense<0.000000e+00> : vector<16x128xf32>
    %14 = tpu.matmul %12, %13, %cst_10 {dimension_numbers = #tpu.dot_dimension_numbers<[1], [0], [0], [1], [0, 0, 1, 1], [], []>} : vector<16x128xbf16>, vector<128x128xbf16>, vector<16x128xf32> -> vector<16x128xf32>
    %c0_11 = arith.constant 0 : index
    %c0_12 = arith.constant 0 : index
    %15 = vector.load %arg6[%c0_11, %c0_12] : memref<1x128xf32, #tpu.memory_space<vmem>>, vector<1x128xf32>
    %16 = vector.broadcast %15 : vector<1x128xf32> to vector<16x128xf32>
    %17 = arith.mulf %14, %16 : vector<16x128xf32>
    %c0_13 = arith.constant 0 : index
    %c0_14 = arith.constant 0 : index
    %18 = vector.load %arg7[%c0_13, %c0_14] : memref<1x128xf32, #tpu.memory_space<vmem>>, vector<1x128xf32>
    %19 = vector.broadcast %18 : vector<1x128xf32> to vector<16x128xf32>
    %20 = arith.addf %17, %19 : vector<16x128xf32>
    %cst_15 = arith.constant 0.000000e+00 : f32
    %21 = vector.broadcast %cst_15 : f32 to vector<16x128xf32>
    %22 = arith.maximumf %20, %21 : vector<16x128xf32>
    %c0_16 = arith.constant 0 : index
    %c0_17 = arith.constant 0 : index
    %23 = vector.load %arg8[%c0_16, %c0_17] : memref<16x128xf32, #tpu.memory_space<vmem>>, vector<16x128xf32>
    tpu.vector_store %arg8[%c0_16, %c0_17], %22 {strides = array<i32>} : memref<16x128xf32, #tpu.memory_space<vmem>>, vector<16x128xf32>,
    return
  }
  func.func @transform_0(%arg0: i32) -> (i32, i32) {
    %c0_i32 = arith.constant 0 : i32
    %c0_i32_0 = arith.constant 0 : i32
    return %arg0, %c0_i32 : i32, i32
  }
  func.func @transform_1(%arg0: i32) -> (i32, i32) {
    %c0_i32 = arith.constant 0 : i32
    %c0_i32_0 = arith.constant 0 : i32
    %c0_i32_1 = arith.constant 0 : i32
    return %c0_i32, %c0_i32_0 : i32, i32
  }
  func.func @transform_2(%arg0: i32) -> (i32, i32) {
    %c0_i32 = arith.constant 0 : i32
    %c0_i32_0 = arith.constant 0 : i32
    %c0_i32_1 = arith.constant 0 : i32
    return %c0_i32, %c0_i32_0 : i32, i32
  }
  func.func @transform_3(%arg0: i32) -> (i32, i32) {
    %c0_i32 = arith.constant 0 : i32
    %c0_i32_0 = arith.constant 0 : i32
    %c0_i32_1 = arith.constant 0 : i32
    return %c0_i32, %c0_i32_0 : i32, i32
  }
  func.func @transform_4(%arg0: i32) -> (i32, i32) {
    %c0_i32 = arith.constant 0 : i32
    %c0_i32_0 = arith.constant 0 : i32
    %c0_i32_1 = arith.constant 0 : i32
    return %c0_i32, %c0_i32_0 : i32, i32
  }
  func.func @transform_5(%arg0: i32) -> (i32, i32) {
    %c0_i32 = arith.constant 0 : i32
    %c0_i32_0 = arith.constant 0 : i32
    %c0_i32_1 = arith.constant 0 : i32
    return %c0_i32, %c0_i32_0 : i32, i32
  }
  func.func @transform_6(%arg0: i32) -> (i32, i32) {
    %c0_i32 = arith.constant 0 : i32
    %c0_i32_0 = arith.constant 0 : i32
    %c0_i32_1 = arith.constant 0 : i32
    return %c0_i32, %c0_i32_0 : i32, i32
  }
  func.func @transform_7(%arg0: i32) -> (i32, i32) {
    %c0_i32 = arith.constant 0 : i32
    %c0_i32_0 = arith.constant 0 : i32
    return %arg0, %c0_i32 : i32, i32
  }
}

</mosaic_0001>

<bundles_post_ra>
// kernel: tpu_custom_call.1
= control target key start
LH: loop header
LB: loop body
LE: loop exit
PB: predicated region body
PF: predicated region fallthrough
CT: control target
= control target key end

     0   :  { %12 = vsyncpa [#allocation3], 0  ;;  %s613_s0 = inlined_call_operand.hbm [shape: f32[16,128], index: 0, kind: input, shape index: {}]   ;;  %s614_s1 = inlined_call_operand.hbm [shape: bf16[128,128], index: 1, kind: input, shape index: {}]   ;;  %s615_s2 = inlined_call_operand.vmem [shape: f32[1,128], index: 2, kind: input, shape index: {}]   ;;  %s616_s3 = inlined_call_operand.vmem [shape: f32[1,128], index: 3, kind: input, shape index: {}]   ;;  %s617_s4 = inlined_call_operand.hbm [shape: bf16[128,128], index: 4, kind: input, shape index: {}]   ;;  %s618_s5 = inlined_call_operand.vmem [shape: f32[1,128], index: 5, kind: input, shape index: {}]   ;;  %s619_s6 = inlined_call_operand.vmem [shape: f32[1,128], index: 6, kind: input, shape index: {}]   ;;  %s620_s7 = inlined_call_operand.hbm [shape: f32[16,128], index: 7, kind: output, shape index: {}]  }
   0x1   :  { %13 = vsyncpa [#allocation6], 0 }
   0x2   :  { %14 = vsyncpa [#allocation4], 0  ;;  %s533_s24 = smov [#allocation5]  }
   0x3   :  { %s32_s25 = sshll.u32 %s533_s24, 4  ;;  %s33_s25 = int_to_ptr.vmem [resolvable:$true] %s32_s25 }
   0x4   :  { %s455_s26 = scalar_lea.vmem %s33_s25, 1024  ;;  %p460_p1 = scmp.lt.s32.totalorder %s33_s25, %s33_s25 }
   0x5   :  { %p456_p0 = scmp.ne.s32.totalorder %s33_s25, %s455_s26  ;;  %p461_p2 = scmp.lt.s32.totalorder %s455_s26, %s455_s26 }
   0x7   :  { %p462_p3 = por %p461_p2, %p460_p1 }
   0x9   :  { %p463_p4 = pnand %p462_p3, %p456_p0 }
   0xb   :  { %466 = shalt.err (!%p463_p4)
}
   0xc   :  { %s534_s27 = smov 64   ;;  %s535_s28 = smov 4  }
   0xd   :  { %38 = dma.hbm_to_vmem [thread:$0]  %s614_s1, 1024, %s33_s25, [#allocation6], %s534_s27, %s534_s27, %s535_s28  }
   0xe   :  { %s536_s8 = smov [#allocation2]  }
   0xf   :  { %s20_s9 = sshll.u32 %s536_s8, 4  ;;  %s21_s9 = int_to_ptr.vmem [resolvable:$true] %s20_s9 }
  0x10   :  { %s475_s10 = scalar_lea.vmem %s21_s9, 256  ;;  %p480_p6 = scmp.lt.s32.totalorder %s21_s9, %s21_s9 }
  0x11   :  { %p476_p5 = scmp.ne.s32.totalorder %s21_s9, %s475_s10  ;;  %p481_p7 = scmp.lt.s32.totalorder %s475_s10, %s475_s10 }
  0x13   :  { %p482_p8 = por %p481_p7, %p480_p6 }
  0x15   :  { %p483_p9 = pnand %p482_p8, %p476_p5 }
  0x17   :  { %486 = shalt.err (!%p483_p9)
}
  0x18   :  { %s537_s11 = smov 128   ;;  %s538_s12 = smov 8  }
  0x19   :  { %26 = dma.hbm_to_vmem [thread:$0]  %s613_s0, 256, %s21_s9, [#allocation3], %s537_s11, %s537_s11, %s538_s12  }
  0x1a   :  { %s539_s1 = smov [#allocation7]  }
  0x1b   :  { %s48_s15 = sshll.u32 %s539_s1, 4  ;;  %s49_s15 = int_to_ptr.vmem [resolvable:$true] %s48_s15 }
  0x1c   :  { %s495_s16 = scalar_lea.vmem %s49_s15, 1024  ;;  %p500_p11 = scmp.lt.s32.totalorder %s49_s15, %s49_s15 }
  0x1d   :  { %p496_p10 = scmp.ne.s32.totalorder %s49_s15, %s495_s16  ;;  %p501_p12 = scmp.lt.s32.totalorder %s495_s16, %s495_s16 }
  0x1f   :  { %p502_p13 = por %p501_p12, %p500_p11 }
  0x21   :  { %p503_p0 = pnand %p502_p13, %p496_p10 }
  0x23   :  { %506 = shalt.err (!%p503_p0)
}
  0x24   :  { %54 = dma.hbm_to_vmem [thread:$0]  %s617_s4, 1024, %s49_s15, [#allocation6], %s534_s27, %s534_s27, %s535_s28  }
  0x25   :  { %527 = dma.done.wait [#allocation3], 256  }
  0x26   :  { %528 = vsyncadd [#allocation3], 4294967040 }
  0x27   :  { %529 = dma.done.wait [#allocation6], 2048  }
  0x28   :  { %530 = vsyncadd [#allocation6], 4294965248  ;;  %v540_v0 = vmov 0.0   ;;  %vm541_vm0 = vmmov 0   ;;  %v431_v1 = vld [vmem:[#allocation5 + $0x38] sm:$0xff]   ;;  %v432_v2 = vld [vmem:[#allocation5 + $0x30] sm:$0xff]  }
  0x29   :  { %381 = vmatprep.subr.bf16.mxu0 %v540_v0  ;;  %397 = vmatprep.mubr.msk.bf16.mxu0 %vm541_vm0, %v540_v0  ;;  %v433_v3 = vld [vmem:[#allocation5 + $0x28] sm:$0xff]   ;;  %v439_v4 = vld [vmem:[#allocation7 + $0x38] sm:$0xff]   ;;  %v434_v5 = vld [vmem:[#allocation5 + $0x20] sm:$0xff]  }
  0x2a   :  { %401 = vmatprep.subr.bf16.mxu1 %v540_v0  ;;  %417 = vmatprep.mubr.msk.bf16.mxu1 %vm541_vm0, %v540_v0  ;;  %v440_v6 = vld [vmem:[#allocation7 + $0x30] sm:$0xff]   ;;  %v435_v7 = vld [vmem:[#allocation5 + $0x18] sm:$0xff]   ;;  %v441_v8 = vld [vmem:[#allocation7 + $0x28] sm:$0xff]  }
  0x2b   :  { %382 = vmatpush3.bf16.msra.mxu0 %v431_v1  ;;  %402 = vmatpush3.bf16.msra.mxu1 %v439_v4  ;;  %v436_v9 = vld [vmem:[#allocation5 + $0x10] sm:$0xff]   ;;  %v442_v10 = vld [vmem:[#allocation7 + $0x20] sm:$0xff]   ;;  %v437_v11 = vld [vmem:[#allocation5 + $0x8] sm:$0xff]  }
  0x2c   :  { %383 = vmatprep.subr.bf16.mxu0 %v540_v0  ;;  %403 = vmatprep.subr.bf16.mxu1 %v540_v0  ;;  %v443_v12 = vld [vmem:[#allocation7 + $0x18] sm:$0xff]   ;;  %v438_v13 = vld [vmem:[#allocation5] sm:$0xff]   ;;  %v69_v14 = vld [vmem:[#allocation2] sm:$0xff] }
  0x2d   :  { %v70_v15 = vld [vmem:[#allocation2 + $0x8] sm:$0xff]  ;;  %v444_v17 = vld [vmem:[#allocation7 + $0x10] sm:$0xff]   ;;  %v445_v18 = vld [vmem:[#allocation7 + $0x8] sm:$0xff]  }
  0x2e   :  { %v71_v16 = vpack.c.bf16 %v70_v15, %v69_v14  ;;  %v446_v19 = vld [vmem:[#allocation7] sm:$0xff]   ;;  %v351_v20 = vld [vmem:[%s615_s2] ss:$0 sm:$0xff] }
  0x2f   :  { %384 = vmatpush3.bf16.msra.mxu0 %v432_v2  ;;  %404 = vmatpush3.bf16.msra.mxu1 %v440_v6  ;;  %v352_v23 = vld [vmem:[%s616_s3] ss:$0 sm:$0xff]  ;;  %s542_s3 = smov [#allocation8]  }
  0x30   :  { %385 = vmatprep.subr.bf16.mxu0 %v540_v0  ;;  %405 = vmatprep.subr.bf16.mxu1 %v540_v0  ;;  %v361_v33 = vld [vmem:[%s618_s5] ss:$0 sm:$0xff]  ;;  %s330_s24 = sshll.u32 %s542_s3, 4  ;;  %s331_s24 = int_to_ptr.vmem [resolvable:$true] %s330_s24 }
  0x31   :  { %v362_v35 = vld [vmem:[%s619_s6] ss:$0 sm:$0xff]  ;;  %s507_s5 = scalar_lea.vmem %s331_s24, 256  ;;  %p512_p2 = scmp.lt.s32.totalorder %s331_s24, %s331_s24 }
  0x32   :  { %p508_p1 = scmp.ne.s32.totalorder %s331_s24, %s507_s5  ;;  %p513_p3 = scmp.lt.s32.totalorder %s507_s5, %s507_s5 }
  0x33   :  { %386 = vmatpush3.bf16.msra.mxu0 %v433_v3  ;;  %406 = vmatpush3.bf16.msra.mxu1 %v441_v8 }
  0x34   :  { %387 = vmatprep.subr.bf16.mxu0 %v540_v0  ;;  %407 = vmatprep.subr.bf16.mxu1 %v540_v0  ;;  %p514_p4 = por %p513_p3, %p512_p2 }
  0x36   :  { %p515_p5 = pnand %p514_p4, %p508_p1 }
  0x37   :  { %388 = vmatpush3.bf16.msra.mxu0 %v434_v5  ;;  %408 = vmatpush3.bf16.msra.mxu1 %v442_v10 }
  0x38   :  { %389 = vmatprep.subr.bf16.mxu0 %v540_v0  ;;  %409 = vmatprep.subr.bf16.mxu1 %v540_v0 }
  0x3b   :  { %390 = vmatpush3.bf16.msra.mxu0 %v435_v7  ;;  %410 = vmatpush3.bf16.msra.mxu1 %v443_v12 }
  0x3c   :  { %391 = vmatprep.subr.bf16.mxu0 %v540_v0  ;;  %411 = vmatprep.subr.bf16.mxu1 %v540_v0 }
  0x3f   :  { %392 = vmatpush3.bf16.msra.mxu0 %v436_v9  ;;  %412 = vmatpush3.bf16.msra.mxu1 %v444_v17 }
  0x40   :  { %393 = vmatprep.subr.bf16.mxu0 %v540_v0  ;;  %413 = vmatprep.subr.bf16.mxu1 %v540_v0 }
  0x43   :  { %394 = vmatpush3.bf16.msra.mxu0 %v437_v11  ;;  %414 = vmatpush3.bf16.msra.mxu1 %v445_v18 }
  0x44   :  { %395 = vmatprep.subr.bf16.mxu0 %v540_v0  ;;  %415 = vmatprep.subr.bf16.mxu1 %v540_v0 }
  0x47   :  { %396 = vmatpush3.bf16.msra.mxu0 %v438_v13  ;;  %416 = vmatpush3.bf16.msra.mxu1 %v446_v19 }
  0x4a   :  { %398 = vmatmul.mubr.bf16.vlgmr.msra.gmra.mxu0 %v71_v16 }
 0x10a   :  { %v170_v21 = vpop.f32.mrf.mxu0 }
 0x10b   :  { %v184_v22 = vmul.f32 %v351_v20, %v170_v21 }
 0x10c   :  { %v399_v24 = vpop.f32.mrf.mxu0 }
 0x10d   :  { %v193_v26 = vadd.f32 %v352_v23, %v184_v22 }
 0x10e   :  { %v173_v25 = vpop.f32.mrf.mxu0 }
 0x10f   :  { %v185_v27 = vmul.f32 %v351_v20, %v173_v25  ;;  %v195_v30 = vmax.f32 %v193_v26, 0.0 }
 0x110   :  { %v400_v28 = vpop.f32.mrf.mxu0 }
 0x111   :  { %v194_v29 = vadd.f32 %v352_v23, %v185_v27 }
 0x113   :  { %v196_v31 = vmax.f32 %v194_v29, 0.0 }
 0x115   :  { %v197_v32 = vpack.c.bf16 %v196_v31, %v195_v30 }
 0x117   :  { %418 = vmatmul.mubr.bf16.vlgmr.msra.gmra.mxu1 %v197_v32 }
 0x1d7   :  { %v296_v34 = vpop.f32.mrf.mxu1 }
 0x1d8   :  { %v310_v36 = vmul.f32 %v361_v33, %v296_v34 }
 0x1d9   :  { %v419_v37 = vpop.f32.mrf.mxu1 }
 0x1da   :  { %v319_v38 = vadd.f32 %v362_v35, %v310_v36 }
 0x1db   :  { %v299_v39 = vpop.f32.mrf.mxu1 }
 0x1dc   :  { %v321_v40 = vmax.f32 %v319_v38, 0.0  ;;  %v311_v41 = vmul.f32 %v361_v33, %v299_v39 }
 0x1dd   :  { %v420_v42 = vpop.f32.mrf.mxu1 }
 0x1de   :  { %323 = vst [vmem:[#allocation8] sm:$0xff] %v321_v40  ;;  %v320_v43 = vadd.f32 %v362_v35, %v311_v41 }
 0x1e0   :  { %v322_v44 = vmax.f32 %v320_v43, 0.0 }
 0x1e2   :  { %324 = vst [vmem:[#allocation8 + $0x8] sm:$0xff] %v322_v44 }
 0x1e3   :  { %518 = shalt.err (!%p515_p5)
}
 0x1e4   :  { %336 = dma.vmem_to_hbm [thread:$0]  %s331_s24, 256, %s620_s7, [#allocation4], %s537_s11, %s537_s11, %s538_s12  }
 0x1e5   :  { %531 = dma.done.wait [#allocation4], 256  }
 0x1e6   :  { %532 = vsyncadd [#allocation4], 4294967040 }
 0x1e7   :  { %340 = vsyncpa [#allocation3], 1 }
 0x1e8   :  { %341 = vsyncpa [#allocation6], 1 }
 0x1e9   :  { %342 = vsyncpa [#allocation4], 1 }

// kernel: tpu_custom_call.1
= control target key start
LH: loop header
LB: loop body
LE: loop exit
PB: predicated region body
PF: predicated region fallthrough
CT: control target
= control target key end

     0   :  { %12 = vsyncpa [#allocation3], 0  ;;  %s613_s0 = inlined_call_operand.hbm [shape: f32[16,128], index: 0, kind: input, shape index: {}]   ;;  %s614_s1 = inlined_call_operand.hbm [shape: bf16[128,128], index: 1, kind: input, shape index: {}]   ;;  %s615_s2 = inlined_call_operand.vmem [shape: f32[1,128], index: 2, kind: input, shape index: {}]   ;;  %s616_s3 = inlined_call_operand.vmem [shape: f32[1,128], index: 3, kind: input, shape index: {}]   ;;  %s617_s4 = inlined_call_operand.hbm [shape: bf16[128,128], index: 4, kind: input, shape index: {}]   ;;  %s618_s5 = inlined_call_operand.vmem [shape: f32[1,128], index: 5, kind: input, shape index: {}]   ;;  %s619_s6 = inlined_call_operand.vmem [shape: f32[1,128], index: 6, kind: input, shape index: {}]   ;;  %s620_s7 = inlined_call_operand.hbm [shape: f32[16,128], index: 7, kind: output, shape index: {}]  }
   0x1   :  { %13 = vsyncpa [#allocation6], 0 }
   0x2   :  { %14 = vsyncpa [#allocation4], 0  ;;  %s533_s24 = smov [#allocation5]  }
   0x3   :  { %s32_s25 = sshll.u32 %s533_s24, 4  ;;  %s33_s25 = int_to_ptr.vmem [resolvable:$true] %s32_s25 }
   0x4   :  { %s455_s26 = scalar_lea.vmem %s33_s25, 1024  ;;  %p460_p1 = scmp.lt.s32.totalorder %s33_s25, %s33_s25 }
   0x5   :  { %p456_p0 = scmp.ne.s32.totalorder %s33_s25, %s455_s26  ;;  %p461_p2 = scmp.lt.s32.totalorder %s455_s26, %s455_s26 }
   0x7   :  { %p462_p3 = por %p461_p2, %p460_p1 }
   0x9   :  { %p463_p4 = pnand %p462_p3, %p456_p0 }
   0xb   :  { %466 = shalt.err (!%p463_p4)
}
   0xc   :  { %s534_s27 = smov 64   ;;  %s535_s28 = smov 4  }
   0xd   :  { %38 = dma.hbm_to_vmem [thread:$0]  %s614_s1, 1024, %s33_s25, [#allocation6], %s534_s27, %s534_s27, %s535_s28  }
   0xe   :  { %s536_s8 = smov [#allocation2]  }
   0xf   :  { %s20_s9 = sshll.u32 %s536_s8, 4  ;;  %s21_s9 = int_to_ptr.vmem [resolvable:$true] %s20_s9 }
  0x10   :  { %s475_s10 = scalar_lea.vmem %s21_s9, 256  ;;  %p480_p6 = scmp.lt.s32.totalorder %s21_s9, %s21_s9 }
  0x11   :  { %p476_p5 = scmp.ne.s32.totalorder %s21_s9, %s475_s10  ;;  %p481_p7 = scmp.lt.s32.totalorder %s475_s10, %s475_s10 }
  0x13   :  { %p482_p8 = por %p481_p7, %p480_p6 }
  0x15   :  { %p483_p9 = pnand %p482_p8, %p476_p5 }
  0x17   :  { %486 = shalt.err (!%p483_p9)
}
  0x18   :  { %s537_s11 = smov 128   ;;  %s538_s12 = smov 8  }
  0x19   :  { %26 = dma.hbm_to_vmem [thread:$0]  %s613_s0, 256, %s21_s9, [#allocation3], %s537_s11, %s537_s11, %s538_s12  }
  0x1a   :  { %s539_s1 = smov [#allocation7]  }
  0x1b   :  { %s48_s15 = sshll.u32 %s539_s1, 4  ;;  %s49_s15 = int_to_ptr.vmem [resolvable:$true] %s48_s15 }
  0x1c   :  { %s495_s16 = scalar_lea.vmem %s49_s15, 1024  ;;  %p500_p11 = scmp.lt.s32.totalorder %s49_s15, %s49_s15 }
  0x1d   :  { %p496_p10 = scmp.ne.s32.totalorder %s49_s15, %s495_s16  ;;  %p501_p12 = scmp.lt.s32.totalorder %s495_s16, %s495_s16 }
  0x1f   :  { %p502_p13 = por %p501_p12, %p500_p11 }
  0x21   :  { %p503_p0 = pnand %p502_p13, %p496_p10 }
  0x23   :  { %506 = shalt.err (!%p503_p0)
}
  0x24   :  { %54 = dma.hbm_to_vmem [thread:$0]  %s617_s4, 1024, %s49_s15, [#allocation6], %s534_s27, %s534_s27, %s535_s28  }
  0x25   :  { %527 = dma.done.wait [#allocation3], 256  }
  0x26   :  { %528 = vsyncadd [#allocation3], 4294967040 }
  0x27   :  { %529 = dma.done.wait [#allocation6], 2048  }
  0x28   :  { %530 = vsyncadd [#allocation6], 4294965248  ;;  %v540_v0 = vmov 0.0   ;;  %vm541_vm0 = vmmov 0   ;;  %v431_v1 = vld [vmem:[#allocation5 + $0x38] sm:$0xff]   ;;  %v432_v2 = vld [vmem:[#allocation5 + $0x30] sm:$0xff]  }
  0x29   :  { %381 = vmatprep.subr.bf16.mxu0 %v540_v0  ;;  %397 = vmatprep.mubr.msk.bf16.mxu0 %vm541_vm0, %v540_v0  ;;  %v433_v3 = vld [vmem:[#allocation5 + $0x28] sm:$0xff]   ;;  %v439_v4 = vld [vmem:[#allocation7 + $0x38] sm:$0xff]   ;;  %v434_v5 = vld [vmem:[#allocation5 + $0x20] sm:$0xff]  }
  0x2a   :  { %401 = vmatprep.subr.bf16.mxu1 %v540_v0  ;;  %417 = vmatprep.mubr.msk.bf16.mxu1 %vm541_vm0, %v540_v0  ;;  %v440_v6 = vld [vmem:[#allocation7 + $0x30] sm:$0xff]   ;;  %v435_v7 = vld [vmem:[#allocation5 + $0x18] sm:$0xff]   ;;  %v441_v8 = vld [vmem:[#allocation7 + $0x28] sm:$0xff]  }
  0x2b   :  { %382 = vmatpush3.bf16.msra.mxu0 %v431_v1  ;;  %402 = vmatpush3.bf16.msra.mxu1 %v439_v4  ;;  %v436_v9 = vld [vmem:[#allocation5 + $0x10] sm:$0xff]   ;;  %v442_v10 = vld [vmem:[#allocation7 + $0x20] sm:$0xff]   ;;  %v437_v11 = vld [vmem:[#allocation5 + $0x8] sm:$0xff]  }
  0x2c   :  { %383 = vmatprep.subr.bf16.mxu0 %v540_v0  ;;  %403 = vmatprep.subr.bf16.mxu1 %v540_v0  ;;  %v443_v12 = vld [vmem:[#allocation7 + $0x18] sm:$0xff]   ;;  %v438_v13 = vld [vmem:[#allocation5] sm:$0xff]   ;;  %v69_v14 = vld [vmem:[#allocation2] sm:$0xff] }
  0x2d   :  { %v70_v15 = vld [vmem:[#allocation2 + $0x8] sm:$0xff]  ;;  %v444_v17 = vld [vmem:[#allocation7 + $0x10] sm:$0xff]   ;;  %v445_v18 = vld [vmem:[#allocation7 + $0x8] sm:$0xff]  }
  0x2e   :  { %v71_v16 = vpack.c.bf16 %v70_v15, %v69_v14  ;;  %v446_v19 = vld [vmem:[#allocation7] sm:$0xff]   ;;  %v351_v20 = vld [vmem:[%s615_s2] ss:$0 sm:$0xff] }
  0x2f   :  { %384 = vmatpush3.bf16.msra.mxu0 %v432_v2  ;;  %404 = vmatpush3.bf16.msra.mxu1 %v440_v6  ;;  %v352_v23 = vld [vmem:[%s616_s3] ss:$0 sm:$0xff]  ;;  %s542_s3 = smov [#allocation8]  }
  0x30   :  { %385 = vmatprep.subr.bf16.mxu0 %v540_v0  ;;  %405 = vmatprep.subr.bf16.mxu1 %v540_v0  ;;  %v361_v33 = vld [vmem:[%s618_s5] ss:$0 sm:$0xff]  ;;  %s330_s24 = sshll.u32 %s542_s3, 4  ;;  %s331_s24 = int_to_ptr.vmem [resolvable:$true] %s330_s24 }
  0x31   :  { %v362_v35 = vld [vmem:[%s619_s6] ss:$0 sm:$0xff]  ;;  %s507_s5 = scalar_lea.vmem %s331_s24, 256  ;;  %p512_p2 = scmp.lt.s32.totalorder %s331_s24, %s331_s24 }
  0x32   :  { %p508_p1 = scmp.ne.s32.totalorder %s331_s24, %s507_s5  ;;  %p513_p3 = scmp.lt.s32.totalorder %s507_s5, %s507_s5 }
  0x33   :  { %386 = vmatpush3.bf16.msra.mxu0 %v433_v3  ;;  %406 = vmatpush3.bf16.msra.mxu1 %v441_v8 }
  0x34   :  { %387 = vmatprep.subr.bf16.mxu0 %v540_v0  ;;  %407 = vmatprep.subr.bf16.mxu1 %v540_v0  ;;  %p514_p4 = por %p513_p3, %p512_p2 }
  0x36   :  { %p515_p5 = pnand %p514_p4, %p508_p1 }
  0x37   :  { %388 = vmatpush3.bf16.msra.mxu0 %v434_v5  ;;  %408 = vmatpush3.bf16.msra.mxu1 %v442_v10 }
  0x38   :  { %389 = vmatprep.subr.bf16.mxu0 %v540_v0  ;;  %409 = vmatprep.subr.bf16.mxu1 %v540_v0 }
  0x3b   :  { %390 = vmatpush3.bf16.msra.mxu0 %v435_v7  ;;  %410 = vmatpush3.bf16.msra.mxu1 %v443_v12 }
  0x3c   :  { %391 = vmatprep.subr.bf16.mxu0 %v540_v0  ;;  %411 = vmatprep.subr.bf16.mxu1 %v540_v0 }
  0x3f   :  { %392 = vmatpush3.bf16.msra.mxu0 %v436_v9  ;;  %412 = vmatpush3.bf16.msra.mxu1 %v444_v17 }
  0x40   :  { %393 = vmatprep.subr.bf16.mxu0 %v540_v0  ;;  %413 = vmatprep.subr.bf16.mxu1 %v540_v0 }
  0x43   :  { %394 = vmatpush3.bf16.msra.mxu0 %v437_v11  ;;  %414 = vmatpush3.bf16.msra.mxu1 %v445_v18 }
  0x44   :  { %395 = vmatprep.subr.bf16.mxu0 %v540_v0  ;;  %415 = vmatprep.subr.bf16.mxu1 %v540_v0 }
  0x47   :  { %396 = vmatpush3.bf16.msra.mxu0 %v438_v13  ;;  %416 = vmatpush3.bf16.msra.mxu1 %v446_v19 }
  0x4a   :  { %398 = vmatmul.mubr.bf16.vlgmr.msra.gmra.mxu0 %v71_v16 }
 0x10a   :  { %v170_v21 = vpop.f32.mrf.mxu0 }
 0x10b   :  { %v184_v22 = vmul.f32 %v351_v20, %v170_v21 }
 0x10c   :  { %v399_v24 = vpop.f32.mrf.mxu0 }
 0x10d   :  { %v193_v26 = vadd.f32 %v352_v23, %v184_v22 }
 0x10e   :  { %v173_v25 = vpop.f32.mrf.mxu0 }
 0x10f   :  { %v185_v27 = vmul.f32 %v351_v20, %v173_v25  ;;  %v195_v30 = vmax.f32 %v193_v26, 0.0 }
 0x110   :  { %v400_v28 = vpop.f32.mrf.mxu0 }
 0x111   :  { %v194_v29 = vadd.f32 %v352_v23, %v185_v27 }
 0x113   :  { %v196_v31 = vmax.f32 %v194_v29, 0.0 }
 0x115   :  { %v197_v32 = vpack.c.bf16 %v196_v31, %v195_v30 }
 0x117   :  { %418 = vmatmul.mubr.bf16.vlgmr.msra.gmra.mxu1 %v197_v32 }
 0x1d7   :  { %v296_v34 = vpop.f32.mrf.mxu1 }
 0x1d8   :  { %v310_v36 = vmul.f32 %v361_v33, %v296_v34 }
 0x1d9   :  { %v419_v37 = vpop.f32.mrf.mxu1 }
 0x1da   :  { %v319_v38 = vadd.f32 %v362_v35, %v310_v36 }
 0x1db   :  { %v299_v39 = vpop.f32.mrf.mxu1 }
 0x1dc   :  { %v321_v40 = vmax.f32 %v319_v38, 0.0  ;;  %v311_v41 = vmul.f32 %v361_v33, %v299_v39 }
 0x1dd   :  { %v420_v42 = vpop.f32.mrf.mxu1 }
 0x1de   :  { %323 = vst [vmem:[#allocation8] sm:$0xff] %v321_v40  ;;  %v320_v43 = vadd.f32 %v362_v35, %v311_v41 }
 0x1e0   :  { %v322_v44 = vmax.f32 %v320_v43, 0.0 }
 0x1e2   :  { %324 = vst [vmem:[#allocation8 + $0x8] sm:$0xff] %v322_v44 }
 0x1e3   :  { %518 = shalt.err (!%p515_p5)
}
 0x1e4   :  { %336 = dma.vmem_to_hbm [thread:$0]  %s331_s24, 256, %s620_s7, [#allocation4], %s537_s11, %s537_s11, %s538_s12  }
 0x1e5   :  { %531 = dma.done.wait [#allocation4], 256  }
 0x1e6   :  { %532 = vsyncadd [#allocation4], 4294967040 }
 0x1e7   :  { %340 = vsyncpa [#allocation3], 1 }
 0x1e8   :  { %341 = vsyncpa [#allocation6], 1 }
 0x1e9   :  { %342 = vsyncpa [#allocation4], 1 }

</bundles_post_ra>
